<compile_context>
chip_gen: v7x
topology: tpu7x:2x2x1
jax: 0.10.0
libtpu: 0.0.40
codegen_flags: <defaults>
</compile_context>

<pallas_src>
import numpy as np

import jax
import jax.numpy as jnp
from jax import lax
from jax.experimental import pallas as pl
from jax.experimental.pallas import tpu as pltpu


def _round_up(n, m):
    return ((n + m - 1) // m) * m


# ----------------------------------------------------------------------------
# Kernel: one batch tile -> dense (TB, 324) output in the PyTorch layout
#         ([light(162) | dark(162)], each = colour-major (i, slot, channel)).
# ----------------------------------------------------------------------------
def _color_kernel(x_ref, a_ref, bm_ref, s_ref, c_ref, dmask_ref,
                  off_ref, cmask_ref, out_ref):
    x = x_ref[...]                                           # (TB, 18) f32
    # Dark pre-base: affine in x; clipped only for colours with i % 3 == 2.
    pre = x * s_ref[...] + c_ref[...]                        # (TB, 18)
    pre = jnp.where(dmask_ref[...] > 0.5, jnp.clip(pre, 0.0, 1.0), pre)
    # Blend chain + slot replication folded into two small f32 MXU matmuls.
    out = jnp.dot(x, a_ref[...], preferred_element_type=jnp.float32,
                  precision=lax.Precision.HIGHEST)
    out = out + jnp.dot(pre, bm_ref[...], preferred_element_type=jnp.float32,
                        precision=lax.Precision.HIGHEST)
    # Slots 1-4 / 6-8: add offset and clip.  Slots 0 / 5: pass through unclipped.
    shifted = jnp.clip(out + off_ref[...], 0.0, 1.0)
    out_ref[...] = jnp.where(cmask_ref[...] > 0.5, shifted, out)


# ----------------------------------------------------------------------------
# Parameter-only preprocessing helpers (tiny; fuse into one small XLA kernel).
# ----------------------------------------------------------------------------
def _blend_coeffs(blend_logits):
    """Unroll `base = base*(1-b_ij) + x_j*b_ij  (j != i, in order)` analytically.
    Returns coef (6,6): coef[i, j] (j != i) multiplies x_j; coef[i, i] multiplies
    the chain's starting base."""
    b = jax.nn.sigmoid(blend_logits)                         # (6, 6)
    rows = []
    for i in range(6):
        js = [j for j in range(6) if j != i]
        coefs = {}
        suffix = jnp.float32(1.0)
        for j in reversed(js):
            coefs[j] = b[i, j] * suffix
            suffix = suffix * (1.0 - b[i, j])
        coefs[i] = suffix
        rows.append(jnp.stack([coefs[j] for j in range(6)]))
    return jnp.stack(rows)                                   # (6, 6)


def _expand_to_slots(coef6x6):
    """(6,6) colour-mixing coefficients -> (18,162) matrix that also replicates
    each colour's 3 channels across its 9 output slots."""
    eye3 = jnp.eye(3, dtype=jnp.float32)
    ones9 = jnp.ones((9,), jnp.float32)
    # A[3j+c, 27i+3s+d] = coef[i, j] * (c == d)
    return jnp.einsum("ij,s,cd->jcisd", coef6x6, ones9, eye3).reshape(18, 162)


def _slot_offsets(var, sign):
    """(6,5,3) variation params -> (162,) per-slot additive offsets."""
    o = jnp.zeros((6, 9, 3), jnp.float32)
    o = o.at[:, 1:5, :].set(sign * 0.2 * jnp.tanh(var[:, :4, :]))
    grads = sign * 0.05 * jnp.arange(1, 4, dtype=jnp.float32)        # (3,)
    o = o.at[:, 6:9, :].set(jnp.broadcast_to(grads[None, :, None], (6, 3, 3)))
    return o.reshape(162)


@jax.jit
def forward(params, x):
    """EnhancedColorGenerator.forward.  x: (B, 18) float32 -> (B, 324)."""
    # NOTE: encoder / color_transform / light_branch / dark_branch never reach
    # the returned tensor (fully overwritten inside _apply_learned_variations),
    # so they are intentionally not computed.
    f32 = jnp.float32
    batch = x.shape[0]

    coef_l = _blend_coeffs(params["light_blend"])                     # (6,6)
    coef_d = _blend_coeffs(params["dark_blend"])                      # (6,6)
    eye6 = jnp.eye(6, dtype=f32)
    a_mat = jnp.concatenate(
        [_expand_to_slots(coef_l),                                    # light: x only
         _expand_to_slots(coef_d * (1.0 - eye6))], axis=1)            # dark: x_j (j!=i)
    b_mat = jnp.concatenate(
        [jnp.zeros((18, 162), f32),
         _expand_to_slots(coef_d * eye6)], axis=1)                    # dark: pre-base

    inf_d = jax.nn.sigmoid(params["dark_base_influence"])             # (6,)
    cid = jnp.arange(6) % 3
    s6 = jnp.where(cid == 0, inf_d, jnp.where(cid == 1, -inf_d, 1.0 + inf_d))
    c6 = jnp.where(cid == 0, 0.15, jnp.where(cid == 1, 0.85 + inf_d, 0.0))
    m6 = (cid == 2).astype(f32)
    s18 = jnp.repeat(s6.astype(f32), 3)[None, :]
    c18 = jnp.repeat(c6.astype(f32), 3)[None, :]
    dmask18 = jnp.repeat(m6, 3)[None, :]

    off324 = jnp.concatenate(
        [_slot_offsets(params["light_variations"], -1.0),
         _slot_offsets(params["dark_variations"], 1.0)])[None, :]     # (1,324)
    cm_slot = jnp.array([0, 1, 1, 1, 1, 0, 1, 1, 1], f32)             # slots 0/5 unclipped
    cm162 = jnp.broadcast_to(cm_slot[None, :, None], (6, 9, 3)).reshape(162)
    cmask324 = jnp.concatenate([cm162, cm162])[None, :]               # (1,324)

    # --- batch-tiled, lane-dense pallas_call ---------------------------------
    tb = min(2048, max(8, _round_up(batch, 8)))   # fits all gens' default VMEM budget
    padded = _round_up(batch, tb)
    x_p = x.astype(f32)
    if padded != batch:
        x_p = jnp.pad(x_p, ((0, padded - batch), (0, 0)))

    def full(shape):
        return pl.BlockSpec(shape, lambda i: (0, 0))

    out = pl.pallas_call(
        _color_kernel,
        out_shape=jax.ShapeDtypeStruct((padded, 324), f32),
        grid=(padded // tb,),
        in_specs=[
            pl.BlockSpec((tb, 18), lambda i: (i, 0)),                 # x tile
            full((18, 324)), full((18, 324)),                         # A, Bm
            full((1, 18)), full((1, 18)), full((1, 18)),              # s, c, dark clip mask
            full((1, 324)), full((1, 324)),                           # offsets, clip mask
        ],
        out_specs=pl.BlockSpec((tb, 324), lambda i: (i, 0)),
        compiler_params=pltpu.CompilerParams(
            dimension_semantics=("parallel",)),
    )(x_p, a_mat, b_mat, s18, c18, dmask18, off324, cmask324)
    return out[:batch] if padded != batch else out


# ----------------------------------------------------------------------------
# Deterministic parameter construction (only the parameters that influence the
# output; the dead MLP weights of the reference module are omitted).
# ----------------------------------------------------------------------------
def build_params(key):
    k1, k2 = jax.random.split(key)
    return {
        "light_variations": jax.random.normal(k1, (6, 5, 3), jnp.float32) * 0.02,
        "dark_variations": jax.random.normal(k2, (6, 5, 3), jnp.float32) * 0.02,
        "light_base_influence": jnp.ones((6,), jnp.float32) * 0.8,
        "dark_base_influence": jnp.ones((6,), jnp.float32) * 0.3,
        "light_blend": jnp.zeros((6, 6), jnp.float32) + 0.05,
        "dark_blend": jnp.zeros((6, 6), jnp.float32) + 0.1,
    }


# ----------------------------------------------------------------------------
# Pure-numpy reference (faithful to the PyTorch module's output path).
# ----------------------------------------------------------------------------
def _ref_output(x, p):
    B = x.shape[0]
    xr = x.reshape(B, 6, 3)
    sig = lambda v: 1.0 / (1.0 + np.exp(-v))

    def apply(var, inf, blend, is_dark):
        res = np.zeros((B, 6, 9, 3), np.float32)
        for i in range(6):
            infl = sig(inf[i])
            if is_dark and i % 3 == 0:
                base = 0.15 + infl * xr[:, i, :]
            elif is_dark and i % 3 == 1:
                base = 0.85 + infl * (1.0 - xr[:, i, :])
            elif is_dark and i % 3 == 2:
                base = np.clip(xr[:, i, :] * (1.0 + infl), 0.0, 1.0)
            else:
                base = xr[:, i, :]
            for j in range(6):
                if i != j:
                    bl = sig(blend[i, j])
                    base = base * (1.0 - bl) + xr[:, j, :] * bl
            res[:, i, 0, :] = base
            for v in range(4):
                off = np.tanh(var[i, v, :]) * 0.2
                res[:, i, v + 1, :] = np.clip(base + (off if is_dark else -off), 0.0, 1.0)
            res[:, i, 5, :] = base
            for g in range(3):
                step = (g + 1) * 0.05
                res[:, i, g + 6, :] = np.clip(base + (step if is_dark else -step), 0.0, 1.0)
        return res.reshape(B, 162)

    light = apply(p["light_variations"], p["light_base_influence"],
                  p["light_blend"], False)
    dark = apply(p["dark_variations"], p["dark_base_influence"],
                 p["dark_blend"], True)
    return np.concatenate([light, dark], axis=1)


# ----------------------------------------------------------------------------
if __name__ == "__main__":
    key = jax.random.PRNGKey(0)
    kp, kx = jax.random.split(key)
    params = build_params(kp)
    np_params = jax.tree_util.tree_map(np.asarray, params)

    for batch in (8, 5):   # 5 exercises the batch-padding path
        x = jax.random.uniform(jax.random.fold_in(kx, batch), (batch, 18), jnp.float32)
        out = jax.block_until_ready(forward(params, x))
        assert out.shape == (batch, 324), out.shape
        ref = _ref_output(np.asarray(x), np_params)
        np.testing.assert_allclose(np.asarray(out), ref, atol=1e-5, rtol=1e-5)

    print("KERNEL_OK")
</pallas_src>

<mosaic_0001>
module attributes {stable_mosaic.version = 11 : i64} {
  func.func @_color_kernel(%arg0: i32, %arg1: memref<8x18xf32, #tpu.memory_space<vmem>>, %arg2: memref<18x324xf32, #tpu.memory_space<vmem>>, %arg3: memref<18x324xf32, #tpu.memory_space<vmem>>, %arg4: memref<1x18xf32, #tpu.memory_space<vmem>>, %arg5: memref<1x18xf32, #tpu.memory_space<vmem>>, %arg6: memref<1x18xf32, #tpu.memory_space<vmem>>, %arg7: memref<1x324xf32, #tpu.memory_space<vmem>>, %arg8: memref<1x324xf32, #tpu.memory_space<vmem>>, %arg9: memref<8x324xf32, #tpu.memory_space<vmem>>) attributes {dimension_semantics = [#tpu.dimension_semantics<parallel>], iteration_bounds = array<i64: 1>, scalar_prefetch = 0 : i64, scratch_operands = 0 : i64, tpu.core_type = #tpu.core_type<tc>, window_params = [{transform_indices = @transform_0, window_bounds = array<i64: 8, 18>}, {pipeline_mode = #tpu.pipeline_mode<synchronous>, transform_indices = @transform_1, window_bounds = array<i64: 18, 324>}, {pipeline_mode = #tpu.pipeline_mode<synchronous>, transform_indices = @transform_2, window_bounds = array<i64: 18, 324>}, {pipeline_mode = #tpu.pipeline_mode<synchronous>, transform_indices = @transform_3, window_bounds = array<i64: 1, 18>}, {pipeline_mode = #tpu.pipeline_mode<synchronous>, transform_indices = @transform_4, window_bounds = array<i64: 1, 18>}, {pipeline_mode = #tpu.pipeline_mode<synchronous>, transform_indices = @transform_5, window_bounds = array<i64: 1, 18>}, {pipeline_mode = #tpu.pipeline_mode<synchronous>, transform_indices = @transform_6, window_bounds = array<i64: 1, 324>}, {pipeline_mode = #tpu.pipeline_mode<synchronous>, transform_indices = @transform_7, window_bounds = array<i64: 1, 324>}, {transform_indices = @transform_8, window_bounds = array<i64: 8, 324>}]} {
    %c0 = arith.constant 0 : index
    %c0_0 = arith.constant 0 : index
    %0 = vector.load %arg1[%c0, %c0_0] : memref<8x18xf32, #tpu.memory_space<vmem>>, vector<8x18xf32>
    %c0_1 = arith.constant 0 : index
    %c0_2 = arith.constant 0 : index
    %1 = vector.load %arg4[%c0_1, %c0_2] : memref<1x18xf32, #tpu.memory_space<vmem>>, vector<1x18xf32>
    %2 = vector.broadcast %1 : vector<1x18xf32> to vector<8x18xf32>
    %3 = arith.mulf %0, %2 : vector<8x18xf32>
    %c0_3 = arith.constant 0 : index
    %c0_4 = arith.constant 0 : index
    %4 = vector.load %arg5[%c0_3, %c0_4] : memref<1x18xf32, #tpu.memory_space<vmem>>, vector<1x18xf32>
    %5 = vector.broadcast %4 : vector<1x18xf32> to vector<8x18xf32>
    %6 = arith.addf %3, %5 : vector<8x18xf32>
    %c0_5 = arith.constant 0 : index
    %c0_6 = arith.constant 0 : index
    %7 = vector.load %arg6[%c0_5, %c0_6] : memref<1x18xf32, #tpu.memory_space<vmem>>, vector<1x18xf32>
    %cst = arith.constant 5.000000e-01 : f32
    %8 = vector.broadcast %cst : f32 to vector<1x18xf32>
    %9 = arith.cmpf ogt, %7, %8 : vector<1x18xf32>
    %cst_7 = arith.constant 0.000000e+00 : f32
    %cst_8 = arith.constant 1.000000e+00 : f32
    %10 = vector.broadcast %cst_7 : f32 to vector<8x18xf32>
    %11 = arith.maximumf %10, %6 : vector<8x18xf32>
    %12 = vector.broadcast %cst_8 : f32 to vector<8x18xf32>
    %13 = arith.minimumf %12, %11 : vector<8x18xf32>
    %14 = vector.shape_cast %9 : vector<1x18xi1> to vector<1x18xi1>
    %15 = vector.broadcast %14 : vector<1x18xi1> to vector<8x18xi1>
    %16 = arith.select %15, %13, %6 : vector<8x18xi1>, vector<8x18xf32>
    %c0_9 = arith.constant 0 : index
    %c0_10 = arith.constant 0 : index
    %17 = vector.load %arg2[%c0_9, %c0_10] : memref<18x324xf32, #tpu.memory_space<vmem>>, vector<18x324xf32>
    %cst_11 = arith.constant dense<0.000000e+00> : vector<8x324xf32>
    %18 = tpu.matmul %0, %17, %cst_11 {dimension_numbers = #tpu.dot_dimension_numbers<[1], [0], [0], [1], [0, 0, 1, 1], [], []>, precision = #tpu.contract_precision<fp32>} : vector<8x18xf32>, vector<18x324xf32>, vector<8x324xf32> -> vector<8x324xf32>
    %c0_12 = arith.constant 0 : index
    %c0_13 = arith.constant 0 : index
    %19 = vector.load %arg3[%c0_12, %c0_13] : memref<18x324xf32, #tpu.memory_space<vmem>>, vector<18x324xf32>
    %cst_14 = arith.constant dense<0.000000e+00> : vector<8x324xf32>
    %20 = tpu.matmul %16, %19, %cst_14 {dimension_numbers = #tpu.dot_dimension_numbers<[1], [0], [0], [1], [0, 0, 1, 1], [], []>, precision = #tpu.contract_precision<fp32>} : vector<8x18xf32>, vector<18x324xf32>, vector<8x324xf32> -> vector<8x324xf32>
    %21 = arith.addf %18, %20 : vector<8x324xf32>
    %c0_15 = arith.constant 0 : index
    %c0_16 = arith.constant 0 : index
    %22 = vector.load %arg7[%c0_15, %c0_16] : memref<1x324xf32, #tpu.memory_space<vmem>>, vector<1x324xf32>
    %23 = vector.broadcast %22 : vector<1x324xf32> to vector<8x324xf32>
    %24 = arith.addf %21, %23 : vector<8x324xf32>
    %cst_17 = arith.constant 0.000000e+00 : f32
    %cst_18 = arith.constant 1.000000e+00 : f32
    %25 = vector.broadcast %cst_17 : f32 to vector<8x324xf32>
    %26 = arith.maximumf %25, %24 : vector<8x324xf32>
    %27 = vector.broadcast %cst_18 : f32 to vector<8x324xf32>
    %28 = arith.minimumf %27, %26 : vector<8x324xf32>
    %c0_19 = arith.constant 0 : index
    %c0_20 = arith.constant 0 : index
    %29 = vector.load %arg8[%c0_19, %c0_20] : memref<1x324xf32, #tpu.memory_space<vmem>>, vector<1x324xf32>
    %cst_21 = arith.constant 5.000000e-01 : f32
    %30 = vector.broadcast %cst_21 : f32 to vector<1x324xf32>
    %31 = arith.cmpf ogt, %29, %30 : vector<1x324xf32>
    %32 = vector.shape_cast %31 : vector<1x324xi1> to vector<1x324xi1>
    %33 = vector.broadcast %32 : vector<1x324xi1> to vector<8x324xi1>
    %34 = arith.select %33, %28, %21 : vector<8x324xi1>, vector<8x324xf32>
    %c0_22 = arith.constant 0 : index
    %c0_23 = arith.constant 0 : index
    %35 = vector.load %arg9[%c0_22, %c0_23] : memref<8x324xf32, #tpu.memory_space<vmem>>, vector<8x324xf32>
    tpu.vector_store %arg9[%c0_22, %c0_23], %34 {strides = array<i32>} : memref<8x324xf32, #tpu.memory_space<vmem>>, vector<8x324xf32>,
    return
  }
  func.func @transform_0(%arg0: i32) -> (i32, i32) {
    %c0_i32 = arith.constant 0 : i32
    %c0_i32_0 = arith.constant 0 : i32
    return %arg0, %c0_i32 : i32, i32
  }
  func.func @transform_1(%arg0: i32) -> (i32, i32) {
    %c0_i32 = arith.constant 0 : i32
    %c0_i32_0 = arith.constant 0 : i32
    %c0_i32_1 = arith.constant 0 : i32
    return %c0_i32, %c0_i32_0 : i32, i32
  }
  func.func @transform_2(%arg0: i32) -> (i32, i32) {
    %c0_i32 = arith.constant 0 : i32
    %c0_i32_0 = arith.constant 0 : i32
    %c0_i32_1 = arith.constant 0 : i32
    return %c0_i32, %c0_i32_0 : i32, i32
  }
  func.func @transform_3(%arg0: i32) -> (i32, i32) {
    %c0_i32 = arith.constant 0 : i32
    %c0_i32_0 = arith.constant 0 : i32
    %c0_i32_1 = arith.constant 0 : i32
    return %c0_i32, %c0_i32_0 : i32, i32
  }
  func.func @transform_4(%arg0: i32) -> (i32, i32) {
    %c0_i32 = arith.constant 0 : i32
    %c0_i32_0 = arith.constant 0 : i32
    %c0_i32_1 = arith.constant 0 : i32
    return %c0_i32, %c0_i32_0 : i32, i32
  }
  func.func @transform_5(%arg0: i32) -> (i32, i32) {
    %c0_i32 = arith.constant 0 : i32
    %c0_i32_0 = arith.constant 0 : i32
    %c0_i32_1 = arith.constant 0 : i32
    return %c0_i32, %c0_i32_0 : i32, i32
  }
  func.func @transform_6(%arg0: i32) -> (i32, i32) {
    %c0_i32 = arith.constant 0 : i32
    %c0_i32_0 = arith.constant 0 : i32
    %c0_i32_1 = arith.constant 0 : i32
    return %c0_i32, %c0_i32_0 : i32, i32
  }
  func.func @transform_7(%arg0: i32) -> (i32, i32) {
    %c0_i32 = arith.constant 0 : i32
    %c0_i32_0 = arith.constant 0 : i32
    %c0_i32_1 = arith.constant 0 : i32
    return %c0_i32, %c0_i32_0 : i32, i32
  }
  func.func @transform_8(%arg0: i32) -> (i32, i32) {
    %c0_i32 = arith.constant 0 : i32
    %c0_i32_0 = arith.constant 0 : i32
    return %arg0, %c0_i32 : i32, i32
  }
}

</mosaic_0001>

<bundles_post_ra>
// kernel: forward.1
= control target key start
LH: loop header
LB: loop body
LE: loop exit
PB: predicated region body
PF: predicated region fallthrough
CT: control target
= control target key end

     0   :  { %vm80_vm0 = vcmask 1041408   ;;  %v2460_v7 = vmov 0.0|0.0   ;;  %v2461_v10 = vmov 0.0   ;;  %vm2462_vm1 = vmmov 0   ;;  %s2935_s0 = inlined_call_operand.vmem [shape: f32[8,18], index: 0, kind: input, shape index: {}]   ;;  %s2936_s1 = inlined_call_operand.vmem [shape: f32[18,324], index: 1, kind: input, shape index: {}]   ;;  %s2937_s2 = inlined_call_operand.vmem [shape: f32[18,324], index: 2, kind: input, shape index: {}]   ;;  %s2938_s3 = inlined_call_operand.vmem [shape: f32[1,18], index: 3, kind: input, shape index: {}]   ;;  %s2939_s4 = inlined_call_operand.vmem [shape: f32[1,18], index: 4, kind: input, shape index: {}]   ;;  %s2940_s5 = inlined_call_operand.vmem [shape: f32[1,18], index: 5, kind: input, shape index: {}]   ;;  %s2941_s6 = inlined_call_operand.vmem [shape: f32[1,324], index: 6, kind: input, shape index: {}]   ;;  %s2942_s7 = inlined_call_operand.vmem [shape: f32[1,324], index: 7, kind: input, shape index: {}]   ;;  %s2943_s8 = inlined_call_operand.hbm [shape: f32[8,324], index: 8, kind: output, shape index: {}]  }
   0x1   :  { %v68_v0 = vld [vmem:[%s2937_s2 + $0x8] sm:$0xff]  ;;  %v71_v1 = vld [vmem:[%s2937_s2 + $0x20] sm:$0xff]  ;;  %v70_v5 = vld [vmem:[%s2937_s2 + $0x18] sm:$0xff]  ;;  %2327 = vmatprep.subr.bf16.mxu1 %v2460_v7  ;;  %160 = vmatprep.mubr.f32.mxu0 %v2461_v10  ;;  %v52_v26 = vlaneseq  ;;  %v2463_v45 = vmov 0  }
   0x2   :  { %v67_v2 = vld [vmem:[%s2937_s2] sm:$0xff]  ;;  %v90_v3 = vand.u32 4294901760, %v68_v0  ;;  %v94_v4 = vand.u32 4294901760, %v71_v1  ;;  %v69_v8 = vld [vmem:[%s2937_s2 + $0x10] sm:$0xff]  ;;  %v72_v9 = vld [vmem:[%s2937_s2 + $0x28] sm:$0xff]  ;;  %v96_v11 = vand.u32 4294901760, %v70_v5  ;;  %2201 = vmatprep.mubr.msk.f32.mxu1 %vm2462_vm1, %v2461_v10 }
   0x3   :  { %v92_v6 = vand.u32 4294901760, %v67_v2  ;;  %v608_v12 = vand.u32 4294901760, %v69_v8  ;;  %v611_v13 = vand.u32 4294901760, %v72_v9  ;;  %v74_v14 = vld [vmem:[%s2937_s2 + $0x38] sm:$0x3]  ;;  %v2556_v23 = vld [vmem:[%s2935_s0] sm:$0xff] }
   0x4   :  { %v2533_v15 = vpack.c.bf16 %v94_v4, %v90_v3  ;;  %v2535_v16 = vsub.f32 %v68_v0, %v90_v3  ;;  %v2537_v17 = vsub.f32 %v71_v1, %v94_v4  ;;  %v73_v18 = vld [vmem:[%s2937_s2 + $0x30] sm:$0x3]  ;;  %v75_v19 = vld [vmem:[%s2937_s2 + $0x40] sm:$0x3]  ;;  %v2565_v27 = vsub.f32 %v70_v5, %v96_v11 }
   0x5   :  { %v2547_v20 = vpack.c.bf16 %v96_v11, %v92_v6  ;;  %v2549_v21 = vsub.f32 %v67_v2, %v92_v6  ;;  %v2551_v22 = vpack.c.bf16 %v611_v13, %v608_v12  ;;  %v2145_v24 = vld [vmem:[%s2938_s3] ss:$0 sm:$0xff]  ;;  %v85_v28 = vsel %vm80_vm0, %v74_v14, 0 }
   0x6   :  { %v47_v25 = vld [vmem:[%s2940_s5] sm:$0x1]  ;;  %2304 = vmatprep.subr.bf16.mxu0 %v2533_v15  ;;  %v82_v29 = vsel %vm80_vm0, %v73_v18, 0  ;;  %v174_v30 = vand.u32 4294901760, %v2535_v16  ;;  %v2572_v31 = vand.u32 4294901760, %v85_v28  ;;  %v186_v33 = vand.u32 4294901760, %v2537_v17 }
   0x7   :  { %2306 = vmatpush1.bf16.msra.mxu0 %v2547_v20  ;;  %2329 = vmatpush3.bf16.msra.mxu1 %v2551_v22  ;;  %v2574_v32 = vand.u32 4294901760, %v82_v29  ;;  %v88_v34 = vsel %vm80_vm0, %v75_v19, 0  ;;  %v2146_v35 = vld [vmem:[%s2939_s4] ss:$0 sm:$0xff]  ;;  %v38_v38 = vmul.f32 %v2145_v24, %v2556_v23  ;;  %vm48_vm2 = vcmp.gt.f32.partialorder %v47_v25, 0.5 }
   0x8   :  { %2199 = vmatprep.subr.mxu1 %v2461_v10  ;;  %v175_v36 = vsub.f32 %v2535_v16, %v174_v30  ;;  %v2585_v37 = vand.u32 4294901760, %v88_v34  ;;  %v2588_v39 = vsub.f32 %v69_v8, %v608_v12  ;;  %99 = vmatprep.subr.mxu0 %v2572_v31  ;;  %v187_v40 = vsub.f32 %v2537_v17, %v186_v33 }
   0x9   :  { %v2594_v41 = vshrl.u32 %v52_v26, 7  ;;  %v2596_v42 = vsub.f32 %v72_v9, %v611_v13  ;;  %v46_v44 = vadd.f32 %v2146_v35, %v38_v38  ;;  %v51_v46 = vsel %vm48_vm2, 1, %v2463_v45 }
   0xa   :  { %v176_v43 = vand.u32 4294901760, %v175_v36 }
   0xb   :  { %13 = vsyncpa [#allocation3], 0  ;;  %101 = vmatpush1.msra.mxu0 %v2574_v32  ;;  %v188_v47 = vand.u32 4294901760, %v187_v40  ;;  %2200 = vmatpush3.msra.mxu1 %v2585_v37  ;;  %v2602_v48 = vsub.s32 0, %v2594_v41  ;;  %v49_v49 = vmax.f32 %v46_v44, 0.0  ;;  %v180_v50 = vand.u32 4294901760, %v2549_v21 }
   0xc   :  { %2330 = vmatprep.subr.bf16.mxu1 %v2460_v7  ;;  %v192_v53 = vand.u32 4294901760, %v2565_v27  ;;  %v688_v54 = vand.u32 4294901760, %v2588_v39  ;;  %vm76_vm3 = vcmask 146432   ;;  %v695_v56 = vand.u32 4294901760, %v2596_v42 }
   0xd   :  { %v2307_v51 = vpack.c.bf16 %v188_v47, %v176_v43  ;;  %v55_v52 = vrot.slane %v51_v46, %v2602_v48  ;;  %v50_v55 = vmin.f32 %v49_v49, 1.0  ;;  %v2611_v57 = vsub.f32 %v85_v28, %v2572_v31  ;;  %v62_v46 = vld [vmem:[%s2936_s1 + $0x20] sm:$0xff] }
   0xe   :  { %v2614_v58 = vsub.f32 %v82_v29, %v2574_v32  ;;  %v2617_v59 = vsub.f32 %v88_v34, %v2585_v37  ;;  %v181_v61 = vsub.f32 %v2549_v21, %v180_v50  ;;  %v193_v63 = vsub.f32 %v2565_v27, %v192_v53 }
   0xf   :  { %2308 = vmatprep.subr.bf16.mxu0 %v2307_v51  ;;  %vm56_vm4 = vcmp.eq.s32.totalorder %v55_v52, 1  ;;  %v689_v0 = vsub.f32 %v2588_v39, %v688_v54  ;;  %v696_v1 = vsub.f32 %v2596_v42, %v695_v56  ;;  %v198_v3 = vand.u32 4294901760, %v2611_v57 }
  0x10   :  { %v57_v60 = vsel %vm56_vm4, %v50_v55, %v46_v44  ;;  %v182_v5 = vand.u32 4294901760, %v181_v61  ;;  %v204_v6 = vand.u32 4294901760, %v2614_v58  ;;  %v194_v8 = vand.u32 4294901760, %v193_v63  ;;  %v59_v44 = vld [vmem:[%s2936_s1 + $0x8] sm:$0xff] }
  0x11   :  { %v78_v62 = vsel %vm76_vm3, %v57_v60, 0  ;;  %v690_v9 = vand.u32 4294901760, %v689_v0  ;;  %v697_v11 = vand.u32 4294901760, %v696_v1  ;;  %v702_v12 = vand.u32 4294901760, %v2617_v59 }
  0x12   :  { %v2632_v2 = vand.u32 4294901760, %v78_v62  ;;  %v199_v14 = vsub.f32 %v2611_v57, %v198_v3  ;;  %v2309_v19 = vpack.c.bf16 %v194_v8, %v182_v5  ;;  %v205_v25 = vsub.f32 %v2614_v58, %v204_v6 }
  0x13   :  { %v2331_v24 = vpack.c.bf16 %v697_v11, %v690_v9  ;;  %v703_v26 = vsub.f32 %v2617_v59, %v702_v12  ;;  %v2311_v36 = vpack.c.bf16 %v2537_v17, %v2535_v16  ;;  %v2313_v38 = vpack.c.bf16 %v2565_v27, %v2549_v21  ;;  %v60_v27 = vld [vmem:[%s2936_s1 + $0x10] sm:$0xff] }
  0x14   :  { %v162_v4 = vsub.f32 %v78_v62, %v2632_v2  ;;  %v200_v29 = vand.u32 4294901760, %v199_v14  ;;  %v206_v34 = vand.u32 4294901760, %v205_v25  ;;  %v2334_v40 = vpack.c.bf16 %v2596_v42, %v2588_v39  ;;  %v63_v39 = vld [vmem:[%s2936_s1 + $0x28] sm:$0xff] }
  0x15   :  { %v704_v35 = vand.u32 4294901760, %v703_v26  ;;  %v2319_v43 = vpack.c.bf16 %v186_v33, %v174_v30  ;;  %v2321_v16 = vpack.c.bf16 %v192_v53, %v180_v50  ;;  %v2340_v17 = vpack.c.bf16 %v695_v56, %v688_v54  ;;  %v58_v30 = vld [vmem:[%s2936_s1] sm:$0xff]  ;;  %v61_v33 = vld [vmem:[%s2936_s1 + $0x18] sm:$0xff]  ;;  %v64_v56 = vld [vmem:[%s2936_s1 + $0x30] sm:$0x3] }
  0x16   :  { %v163_v13 = vand.u32 4294901760, %v162_v4  ;;  %v1091_v21 = vand.u32 4294901760, %v59_v44  ;;  %v1095_v47 = vand.u32 4294901760, %v62_v46  ;;  %v1093_v42 = vand.u32 4294901760, %v58_v30  ;;  %v65_v50 = vld [vmem:[%s2936_s1 + $0x38] sm:$0x3] }
  0x17   :  { %v1097_v49 = vand.u32 4294901760, %v61_v33  ;;  %v1080_v51 = vsel %vm76_vm3, %v2556_v23, 0  ;;  %v1609_v52 = vand.u32 4294901760, %v60_v27  ;;  %v1612_v53 = vand.u32 4294901760, %v63_v39 }
  0x18   :  { %v164_v18 = vsub.f32 %v162_v4, %v163_v13  ;;  %v2717_v54 = vsub.f32 %v59_v44, %v1091_v21  ;;  %v2719_v55 = vsub.f32 %v62_v46, %v1095_v47  ;;  %v1086_v23 = vsel %vm80_vm0, %v65_v50, 0 }
  0x19   :  { %v2731_v60 = vand.u32 4294901760, %v1080_v51  ;;  %v2733_v61 = vsub.f32 %v58_v30, %v1093_v42  ;;  %v2735_v62 = vsub.f32 %v61_v33, %v1097_v49  ;;  %v2741_v63 = vsub.f32 %v60_v27, %v1609_v52 }
  0x1a   :  { %v165_v28 = vand.u32 4294901760, %v164_v18  ;;  %v2743_v0 = vsub.f32 %v63_v39, %v1612_v53  ;;  %v1083_v1 = vsel %vm80_vm0, %v64_v56, 0  ;;  %v1187_v5 = vand.u32 4294901760, %v2719_v55 }
  0x1b   :  { %v1193_v8 = vand.u32 4294901760, %v2735_v62  ;;  %v2764_v9 = vpack.c.bf16 %v1095_v47, %v1091_v21  ;;  %v2784_v18 = vpack.c.bf16 %v1097_v49, %v1093_v42  ;;  %v2353_v50 = vpack.c.bf16 %v2719_v55, %v2717_v54 }
  0x1c   :  { %166 = vmatmul.mubr.f32.vlgmr.msra.gmra.mrb[0].mxu0 %v165_v28  ;;  %2202 = vmatmul.mubr.f32.vlgmr.msra.gmra.mrb[0].mxu1 %v165_v28  ;;  %vm2129_vm8 = vcmask 556032  }
  0x1d   :  { %2310 = vmatpush1.bf16.msra.mxu0 %v2309_v19  ;;  %2332 = vmatpush3.bf16.msra.mxu1 %v2331_v24  ;;  %v1194_v26 = vsub.f32 %v2735_v62, %v1193_v8 }
  0x1e   :  { %201 = vmatprep.subr.mxu0 %v200_v29  ;;  %2208 = vmatprep.subr.mxu1 %v2461_v10 }
  0x1f   :  { %266 = vmatprep.mubr.f32.mxu0 %v2461_v10  ;;  %2210 = vmatprep.mubr.msk.f32.mxu1 %vm2462_vm1, %v2461_v10 }
  0x21   :  { %207 = vmatpush1.msra.mxu0 %v206_v34  ;;  %2209 = vmatpush3.msra.mxu1 %v704_v35 }
  0x22   :  { %2312 = vmatprep.subr.bf16.mxu0 %v2311_v36  ;;  %2333 = vmatprep.subr.bf16.mxu1 %v2460_v7 }
  0x24   :  { %268 = vmatmul.mubr.f32.vlgmr.msra.gmra.mrb[0].mxu0 %v2632_v2  ;;  %2211 = vmatmul.mubr.f32.vlgmr.msra.gmra.mrb[0].mxu1 %v2632_v2 }
  0x25   :  { %2314 = vmatpush1.bf16.msra.mxu0 %v2313_v38  ;;  %2335 = vmatpush3.bf16.msra.mxu1 %v2334_v40  ;;  %v1195_v40 = vand.u32 4294901760, %v1194_v26 }
  0x26   :  { %288 = vmatprep.subr.mxu0 %v2611_v57  ;;  %2217 = vmatprep.subr.mxu1 %v2461_v10  ;;  %v66_v57 = vld [vmem:[%s2936_s1 + $0x40] sm:$0x3] }
  0x27   :  { %350 = vmatprep.mubr.f32.mxu0 %v2461_v10  ;;  %2219 = vmatprep.mubr.msk.f32.mxu1 %vm2462_vm1, %v2461_v10 }
  0x29   :  { %291 = vmatpush1.msra.mxu0 %v2614_v58  ;;  %2218 = vmatpush3.msra.mxu1 %v2617_v59  ;;  %v1175_v58 = vand.u32 4294901760, %v2717_v54  ;;  %v2755_v59 = vand.u32 4294901760, %v1083_v1 }
  0x2a   :  { %2316 = vmatprep.subr.bf16.mxu0 %v2533_v15  ;;  %2336 = vmatprep.subr.bf16.mxu1 %v2460_v7 }
  0x2b   :  { %v1176_v14 = vsub.f32 %v2717_v54, %v1175_v58  ;;  %v2789_v19 = vsub.f32 %v1083_v1, %v2755_v59 }
  0x2c   :  { %353 = vmatmul.mubr.f32.vlgmr.msra.gmra.mrb[0].mxu0 %v162_v4  ;;  %2220 = vmatmul.mubr.f32.vlgmr.msra.gmra.mrb[0].mxu1 %v162_v4  ;;  %v1089_v4 = vsel %vm80_vm0, %v66_v57, 0 }
  0x2d   :  { %2318 = vmatpush1.bf16.msra.mxu0 %v2547_v20  ;;  %2338 = vmatpush3.bf16.msra.mxu1 %v2551_v22  ;;  %v2766_v11 = vand.u32 4294901760, %v1089_v4  ;;  %v1177_v35 = vand.u32 4294901760, %v1176_v14  ;;  %v1205_v46 = vand.u32 4294901760, %v2789_v19 }
  0x2e   :  { %368 = vmatprep.subr.mxu0 %v2572_v31  ;;  %2226 = vmatprep.subr.mxu1 %v2461_v10 }
  0x2f   :  { %429 = vmatprep.mubr.f32.mxu0 %v2461_v10  ;;  %2228 = vmatprep.mubr.msk.f32.mxu1 %vm2462_vm1, %v2461_v10  ;;  %v2803_v28 = vsub.f32 %v1089_v4, %v2766_v11  ;;  %v1206_v47 = vsub.f32 %v2789_v19, %v1205_v46 }
  0x31   :  { %370 = vmatpush1.msra.mxu0 %v2574_v32  ;;  %2227 = vmatpush3.msra.mxu1 %v2585_v37  ;;  %v1207_v42 = vand.u32 4294901760, %v1206_v47 }
  0x32   :  { %2320 = vmatprep.subr.bf16.mxu0 %v2319_v43  ;;  %2339 = vmatprep.subr.bf16.mxu1 %v2460_v7 }
  0x34   :  { %433 = vmatmul.mubr.f32.vlgmr.msra.gmra.mrb[0].mxu0 %v163_v13  ;;  %2229 = vmatmul.mubr.f32.vlgmr.msra.gmra.mrb[0].mxu1 %v163_v13  ;;  %v1696_v13 = vand.u32 4294901760, %v2743_v0 }
  0x35   :  { %2322 = vmatpush1.bf16.msra.mxu0 %v2321_v16  ;;  %2341 = vmatpush3.bf16.msra.mxu1 %v2340_v17  ;;  %v1703_v16 = vand.u32 4294901760, %v2803_v28 }
  0x36   :  { %458 = vmatprep.subr.mxu0 %v198_v3  ;;  %2235 = vmatprep.subr.mxu1 %v2461_v10  ;;  %v2748_v3 = vand.u32 4294901760, %v1086_v23  ;;  %v1697_v34 = vsub.f32 %v2743_v0, %v1696_v13 }
  0x37   :  { %521 = vmatprep.mubr.f32.mxu0 %v2461_v10  ;;  %2237 = vmatprep.mubr.msk.f32.mxu1 %vm2462_vm1, %v2461_v10  ;;  %v1704_v27 = vsub.f32 %v2803_v28, %v1703_v16 }
  0x38   :  { %v1698_v44 = vand.u32 4294901760, %v1697_v34 }
  0x39   :  { %462 = vmatpush1.msra.mxu0 %v204_v6  ;;  %2236 = vmatpush3.msra.mxu1 %v702_v12  ;;  %v2758_v6 = vsub.f32 %v1080_v51, %v2731_v60  ;;  %v1689_v12 = vand.u32 4294901760, %v2741_v63  ;;  %v1705_v49 = vand.u32 4294901760, %v1704_v27  ;;  %v2355_v51 = vpack.c.bf16 %v2735_v62, %v2733_v61 }
  0x3a   :  { %2324 = vmatprep.subr.bf16.mxu0 %v2533_v15  ;;  %2342 = vmatprep.subr.bf16.mxu1 %v2460_v7  ;;  %v1181_v15 = vand.u32 4294901760, %v2733_v61 }
  0x3b   :  { %v2792_v24 = vand.u32 4294901760, %v2758_v6  ;;  %v1690_v29 = vsub.f32 %v2741_v63, %v1689_v12  ;;  %v2382_v54 = vpack.c.bf16 %v1696_v13, %v1689_v12 }
  0x3c   :  { %523 = vmatmul.mubr.f32.vlgmr.msra.gmra.mrb[0].mxu0 %v2632_v2  ;;  %2238 = vmatmul.mubr.f32.vlgmr.msra.gmra.mrb[0].mxu1 %v2632_v2  ;;  %v1182_v25 = vsub.f32 %v2733_v61, %v1181_v15  ;;  %v2363_v56 = vpack.c.bf16 %v1193_v8, %v1181_v15 }
  0x3d   :  { %2326 = vmatpush1.bf16.msra.mxu0 %v2547_v20  ;;  %2344 = vmatpush3.bf16.msra.mxu1 %v2551_v22  ;;  %v1188_v20 = vsub.f32 %v2719_v55, %v1187_v5  ;;  %v2779_v22 = vsub.f32 %v1086_v23, %v2748_v3  ;;  %v1691_v43 = vand.u32 4294901760, %v1690_v29  ;;  %v2092_v55 = vsub.s32 2, %v2594_v41  ;;  %v2080_v23 = vld [vmem:[%s2941_s6] sm:$0x7]  ;;  %s2464_s6 = smov [#allocation2]  }
  0x3e   :  { %538 = vmatprep.subr.mxu0 %v2572_v31  ;;  %2244 = vmatprep.subr.mxu1 %v2461_v10  ;;  %v2786_v31 = vpack.c.bf16 %v1612_v53, %v1609_v52  ;;  %v1183_v38 = vand.u32 4294901760, %v1182_v25  ;;  %v2376_v52 = vpack.c.bf16 %v2743_v0, %v2741_v63  ;;  %v2361_v53 = vpack.c.bf16 %v1187_v5, %v1175_v58 }
  0x3f   :  { %599 = vmatprep.mubr.f32.mxu0 %v2461_v10  ;;  %2246 = vmatprep.mubr.msk.f32.mxu1 %vm2462_vm1, %v2461_v10  ;;  %v1189_v36 = vand.u32 4294901760, %v1188_v20  ;;  %v2373_v21 = vpack.c.bf16 %v1698_v44, %v1691_v43  ;;  %v2085_v57 = vrot.slane %v2080_v23, %v2602_v48  ;;  %v2093_v62 = vrot.slane %v2080_v23, %v2092_v55 }
  0x40   :  { %v2351_v33 = vpack.c.bf16 %v1195_v40, %v1183_v38 }
  0x41   :  { %540 = vmatpush1.msra.mxu0 %v2574_v32  ;;  %2245 = vmatpush3.msra.mxu1 %v2585_v37  ;;  %v1199_v32 = vand.u32 4294901760, %v2779_v22  ;;  %v1165_v37 = vsub.f32 %v2758_v6, %v2792_v24 }
  0x42   :  { %2346 = vmatprep.subr.bf16.mxu0 %v2764_v9  ;;  %2369 = vmatprep.subr.bf16.mxu1 %v2460_v7 }
  0x43   :  { %v1200_v17 = vsub.f32 %v2779_v22, %v1199_v32  ;;  %v1166_v30 = vand.u32 4294901760, %v1165_v37 }
  0x44   :  { %601 = vmatmul.mubr.f32.vlgmr.msra.gmra.mrb[0].mxu0 %v2632_v2  ;;  %2247 = vmatmul.mubr.f32.vlgmr.msra.gmra.mrb[0].mxu1 %v2632_v2  ;;  %v2349_v2 = vpack.c.bf16 %v1189_v36, %v1177_v35 }
  0x45   :  { %2348 = vmatpush1.bf16.msra.mxu0 %v2784_v18  ;;  %2371 = vmatpush3.bf16.msra.mxu1 %v2786_v31  ;;  %v1201_v39 = vand.u32 4294901760, %v1200_v17 }
  0x46   :  { %1100 = vmatprep.subr.mxu0 %v2748_v3  ;;  %2253 = vmatprep.subr.mxu1 %v2461_v10 }
  0x47   :  { %1161 = vmatprep.mubr.f32.mxu0 %v2461_v10  ;;  %2255 = vmatprep.mubr.msk.f32.mxu1 %vm2462_vm1, %v2461_v10 }
  0x49   :  { %1102 = vmatpush1.msra.mxu0 %v2755_v59  ;;  %2254 = vmatpush3.msra.mxu1 %v2766_v11 }
  0x4a   :  { %2350 = vmatprep.subr.bf16.mxu0 %v2349_v2  ;;  %2372 = vmatprep.subr.bf16.mxu1 %v2460_v7 }
  0x4c   :  { %1167 = vmatmul.mubr.f32.vlgmr.msra.gmra.mrb[0].mxu0 %v1166_v30  ;;  %2256 = vmatmul.mubr.f32.vlgmr.msra.gmra.mrb[0].mxu1 %v1166_v30 }
  0x4d   :  { %2352 = vmatpush1.bf16.msra.mxu0 %v2351_v33  ;;  %2374 = vmatpush3.bf16.msra.mxu1 %v2373_v21 }
  0x4e   :  { %1202 = vmatprep.subr.mxu0 %v1201_v39  ;;  %2262 = vmatprep.subr.mxu1 %v2461_v10 }
  0x4f   :  { %1267 = vmatprep.mubr.f32.mxu0 %v2461_v10  ;;  %2264 = vmatprep.mubr.msk.f32.mxu1 %vm2462_vm1, %v2461_v10 }
  0x51   :  { %1208 = vmatpush1.msra.mxu0 %v1207_v42  ;;  %2263 = vmatpush3.msra.mxu1 %v1705_v49 }
  0x52   :  { %2354 = vmatprep.subr.bf16.mxu0 %v2353_v50  ;;  %2375 = vmatprep.subr.bf16.mxu1 %v2460_v7 }
  0x54   :  { %1269 = vmatmul.mubr.f32.vlgmr.msra.gmra.mrb[0].mxu0 %v2731_v60  ;;  %2265 = vmatmul.mubr.f32.vlgmr.msra.gmra.mrb[0].mxu1 %v2731_v60 }
  0x55   :  { %2356 = vmatpush1.bf16.msra.mxu0 %v2355_v51  ;;  %2377 = vmatpush3.bf16.msra.mxu1 %v2376_v52 }
  0x56   :  { %1289 = vmatprep.subr.mxu0 %v2779_v22  ;;  %2271 = vmatprep.subr.mxu1 %v2461_v10 }
  0x57   :  { %1351 = vmatprep.mubr.f32.mxu0 %v2461_v10  ;;  %2273 = vmatprep.mubr.msk.f32.mxu1 %vm2462_vm1, %v2461_v10 }
  0x59   :  { %1292 = vmatpush1.msra.mxu0 %v2789_v19  ;;  %2272 = vmatpush3.msra.mxu1 %v2803_v28 }
  0x5a   :  { %2358 = vmatprep.subr.bf16.mxu0 %v2764_v9  ;;  %2378 = vmatprep.subr.bf16.mxu1 %v2460_v7 }
  0x5c   :  { %1354 = vmatmul.mubr.f32.vlgmr.msra.gmra.mrb[0].mxu0 %v2758_v6  ;;  %2274 = vmatmul.mubr.f32.vlgmr.msra.gmra.mrb[0].mxu1 %v2758_v6 }
  0x5d   :  { %2360 = vmatpush1.bf16.msra.mxu0 %v2784_v18  ;;  %2380 = vmatpush3.bf16.msra.mxu1 %v2786_v31 }
  0x5e   :  { %1369 = vmatprep.subr.mxu0 %v2748_v3  ;;  %2280 = vmatprep.subr.mxu1 %v2461_v10 }
  0x5f   :  { %1430 = vmatprep.mubr.f32.mxu0 %v2461_v10  ;;  %2282 = vmatprep.mubr.msk.f32.mxu1 %vm2462_vm1, %v2461_v10 }
  0x61   :  { %1371 = vmatpush1.msra.mxu0 %v2755_v59  ;;  %2281 = vmatpush3.msra.mxu1 %v2766_v11 }
  0x62   :  { %2362 = vmatprep.subr.bf16.mxu0 %v2361_v53  ;;  %2381 = vmatprep.subr.bf16.mxu1 %v2460_v7 }
  0x64   :  { %1434 = vmatmul.mubr.f32.vlgmr.msra.gmra.mrb[0].mxu0 %v2792_v24  ;;  %2283 = vmatmul.mubr.f32.vlgmr.msra.gmra.mrb[0].mxu1 %v2792_v24 }
  0x65   :  { %2364 = vmatpush1.bf16.msra.mxu0 %v2363_v56  ;;  %2383 = vmatpush3.bf16.msra.mxu1 %v2382_v54 }
  0x66   :  { %1459 = vmatprep.subr.mxu0 %v1199_v32  ;;  %2289 = vmatprep.subr.mxu1 %v2461_v10 }
  0x67   :  { %1522 = vmatprep.mubr.f32.mxu0 %v2461_v10  ;;  %2291 = vmatprep.mubr.msk.f32.mxu1 %vm2462_vm1, %v2461_v10 }
  0x69   :  { %1463 = vmatpush1.msra.mxu0 %v1205_v46  ;;  %2290 = vmatpush3.msra.mxu1 %v1703_v16 }
  0x6a   :  { %2366 = vmatprep.subr.bf16.mxu0 %v2764_v9  ;;  %2384 = vmatprep.subr.bf16.mxu1 %v2460_v7  ;;  %v2106_v7 = vld [vmem:[%s2942_s7] sm:$0x7]  ;;  %s2137_s7 = sshll.u32 %s2464_s6, 4  ;;  %s2138_s7 = int_to_ptr.vmem [resolvable:$true] %s2137_s7 }
  0x6b   :  { %vm2107_vm5 = vcmp.gt.f32.partialorder %v2106_v7, 0.5  ;;  %s2436_s25 = scalar_lea.vmem %s2138_s7, 384  ;;  %p2441_p1 = scmp.lt.s32.totalorder %s2138_s7, %s2138_s7 }
  0x6c   :  { %1524 = vmatmul.mubr.f32.vlgmr.msra.gmra.mrb[0].mxu0 %v2731_v60  ;;  %2292 = vmatmul.mubr.f32.vlgmr.msra.gmra.mrb[0].mxu1 %v2731_v60  ;;  %v2108_v61 = vsel %vm2107_vm5, 1, %v2463_v45  ;;  %p2437_p0 = scmp.ne.s32.totalorder %s2138_s7, %s2436_s25  ;;  %p2442_p2 = scmp.lt.s32.totalorder %s2436_s25, %s2436_s25 }
  0x6d   :  { %2368 = vmatpush1.bf16.msra.mxu0 %v2784_v18  ;;  %2386 = vmatpush3.bf16.msra.mxu1 %v2786_v31  ;;  %v2112_v0 = vrot.slane %v2108_v61, %v2602_v48 }
  0x6e   :  { %1539 = vmatprep.subr.mxu0 %v2748_v3  ;;  %2298 = vmatprep.subr.mxu1 %v2461_v10  ;;  %v2120_v3 = vrot.slane %v2108_v61, %v2092_v55  ;;  %p2443_p3 = por %p2442_p2, %p2441_p1 }
  0x6f   :  { %1600 = vmatprep.mubr.f32.mxu0 %v2461_v10  ;;  %2300 = vmatprep.mubr.msk.f32.mxu1 %vm2462_vm1, %v2461_v10  ;;  %v2088_v10 = vsub.s32 1, %v2594_v41  ;;  %vm2121_vm6 = vcmp.eq.s32.totalorder %v2112_v0, 1 }
  0x70   :  { %vm2123_vm7 = vcmp.eq.s32.totalorder %v2120_v3, 1  ;;  %p2444_p4 = pnand %p2443_p3, %p2437_p0 }
  0x71   :  { %1541 = vmatpush1.msra.mxu0 %v2755_v59  ;;  %2299 = vmatpush3.msra.mxu1 %v2766_v11  ;;  %v2089_v63 = vrot.slane %v2080_v23, %v2088_v10  ;;  %v2116_v59 = vrot.slane %v2108_v61, %v2088_v10 }
  0x73   :  { %vm2122_vm9 = vcmp.eq.s32.totalorder %v2116_v59, 1 }
  0x74   :  { %1602 = vmatmul.mubr.f32.vlgmr.msra.gmra.mrb[0].mxu0 %v2731_v60  ;;  %2301 = vmatmul.mubr.f32.vlgmr.msra.gmra.mrb[0].mxu1 %v2731_v60 }
 0x147   :  { %v1603_v60 = vpop.f32.mrb[0].mxu0  ;;  %v2076_v1 = vpop.f32.mrb[0].mxu1 }
 0x148   :  { %v2097_v4 = vadd.f32 %v2085_v57, %v1603_v60  ;;  %v2099_v58 = vadd.f32 %v2093_v62, %v2076_v1  ;;  %v1605_v5 = vpop.f32.mrb[1].mxu0  ;;  %v2302_v6 = vpop.f32.mrb[1].mxu1 }
 0x149   :  { %v2098_v15 = vadd.f32 %v2089_v63, %v1605_v5 }
 0x14a   :  { %v2100_v8 = vmax.f32 %v2097_v4, 0.0  ;;  %v2102_v9 = vmax.f32 %v2099_v58, 0.0 }
 0x14b   :  { %v2101_v41 = vmax.f32 %v2098_v15, 0.0 }
 0x14c   :  { %v2103_v45 = vmin.f32 %v2100_v8, 1.0  ;;  %v2105_v11 = vmin.f32 %v2102_v9, 1.0 }
 0x14d   :  { %v2104_v48 = vmin.f32 %v2101_v41, 1.0 }
 0x14e   :  { %v2124_v12 = vsel %vm2121_vm6, %v2103_v45, %v1603_v60  ;;  %v2126_v13 = vsel %vm2123_vm7, %v2105_v11, %v2076_v1 }
 0x14f   :  { %2127 = vst [vmem:[#allocation2] sm:$0xff] %v2124_v12  ;;  %2130 = vst.msk [vmem:[#allocation2 + $0x10] sm:$0xff] %vm2129_vm8, %v2126_v13  ;;  %v2125_v14 = vsel %vm2122_vm9, %v2104_v48, %v1605_v5 }
 0x150   :  { %2128 = vst [vmem:[#allocation2 + $0x8] sm:$0xff] %v2125_v14 }
 0x151   :  { %2447 = shalt.err (!%p2444_p4)
}
 0x152   :  { %s2448_s27 = scalar_lea.hbm %s2943_s8, 384 }
 0x153   :  { %p2449_p5 = scmp.ne.s32.totalorder %s2943_s8, %s2448_s27  ;;  %p2452_p6 = scmp.lt.u32.totalorder %s2448_s27, %s2943_s8 }
 0x155   :  { %p2454_p7 = pnand %p2452_p6, %p2449_p5 }
 0x157   :  { %2457 = shalt.err (!%p2454_p7)
}
 0x158   :  { %2140 = dma.vmem_to_hbm [thread:$0]  %s2138_s7, 384, %s2943_s8, [#allocation3]  }
 0x159   :  { %2458 = dma.done.wait [#allocation3], 384  }
 0x15a   :  { %2459 = vsyncadd [#allocation3], 4294966912 }
 0x15b   :  { %2144 = vsyncpa [#allocation3], 1 }

</bundles_post_ra>
